<compile_context>
chip_gen: v7x
topology: tpu7x:2x2x1
jax: 0.10.0
libtpu: 0.0.40
codegen_flags: <defaults>
</compile_context>

<pallas_src>
import functools
import math

import jax
import jax.numpy as jnp
from jax.experimental import pallas as pl
from jax.experimental.pallas import tpu as pltpu


def _round_up(x: int, m: int) -> int:
    return (x + m - 1) // m * m


def _pick_tk(h_p: int, cap: int) -> int:
    """Largest multiple of 128 that divides h_p and is <= cap."""
    cap = min(cap, h_p)
    cap -= cap % 128
    for cand in range(cap, 0, -128):
        if h_p % cand == 0:
            return cand
    return 128  # unreachable: h_p is a multiple of 128


def prepare_norm_head(weight: jax.Array, eps: float = 1e-12):
    """One-time (init-time) preparation, mirroring the module's eval-branch
    caching: zero-pad hidden to a multiple of 128 and precompute per-row
    inverse norms in f32.  Do NOT call this per forward step in inference."""
    vocab, hidden = weight.shape
    h_p = _round_up(hidden, 128)
    w32 = weight.astype(jnp.float32)
    sumsq = jnp.sum(w32 * w32, axis=1)
    # F.normalize: w / max(||w||, eps)  <=>  scale by rsqrt(max(sumsq, eps^2))
    inv_norm = jax.lax.rsqrt(jnp.maximum(sumsq, eps * eps)).reshape(1, vocab)
    if h_p != hidden:
        weight = jnp.pad(weight, ((0, 0), (0, h_p - hidden)))  # explicit zero fill
    return weight, inv_norm


def _normhead_fullk_kernel(x_ref, w_ref, inv_ref, o_ref):
    # x_ref:   (TM, Hp) activations (input dtype)
    # w_ref:   (TN, Hp) raw weight tile (input dtype)
    # inv_ref: (1,  TN) f32 per-row inverse norms
    # o_ref:   (TM, TN) logits tile
    acc = jax.lax.dot_general(
        x_ref[...], w_ref[...],
        dimension_numbers=(((1,), (1,)), ((), ())),   # x @ w.T, no transpose copy
        preferred_element_type=jnp.float32,
    )
    o_ref[...] = (acc * inv_ref[...]).astype(o_ref.dtype)


def _normhead_ktiled_kernel(x_ref, w_ref, inv_ref, o_ref, acc_ref, *, tk):
    # x_ref:   (TM, Hp) full-hidden activations, sliced per k step
    # w_ref:   (TN, TK) raw weight tile
    # acc_ref: (TM, TN) f32 accumulator scratch
    k = pl.program_id(2)

    @pl.when(k == 0)
    def _init():
        acc_ref[...] = jnp.zeros_like(acc_ref)

    ks = pl.multiple_of(k * tk, tk)
    acc_ref[...] += jax.lax.dot_general(
        x_ref[:, pl.ds(ks, tk)], w_ref[...],
        dimension_numbers=(((1,), (1,)), ((), ())),
        preferred_element_type=jnp.float32,
    )

    @pl.when(k == pl.num_programs(2) - 1)
    def _finalize():
        o_ref[...] = (acc_ref[...] * inv_ref[...]).astype(o_ref.dtype)


def norm_head(hidden_states: jax.Array,
              weight: jax.Array,
              inv_norm: jax.Array | None = None,
              *,
              tm: int | None = None,
              tn: int = 1024,
              tk_cap: int = 2048,
              vmem_budget_bytes: int = 40 * (1 << 20),
              weight_pipeline_depth: int | None = None) -> jax.Array:
    """NormHead forward:  logits = x @ normalize(weight, dim=-1).T

    hidden_states: [..., hidden]
    weight:        [vocab, hidden_padded]  (output of prepare_norm_head, or raw)
    inv_norm:      [1, vocab] f32 inverse row norms (from prepare_norm_head);
                   if None, it is computed here (one extra weight read/call).
    For v6e prefill, consider tm=1024 / tn=2048; defaults fit all of v5e/v6e/v7x.
    """
    *lead, hidden = hidden_states.shape
    vocab = weight.shape[0]
    m = int(math.prod(lead)) if lead else 1

    # Convenience / "training-branch" path: prepare per call.  For inference,
    # call prepare_norm_head(weight) ONCE at init and pass the results in.
    if inv_norm is None or weight.shape[1] % 128 != 0:
        w_prep, inv_prep = prepare_norm_head(weight[:, :hidden])
        weight = w_prep
        if inv_norm is None:
            inv_norm = inv_prep

    h_p = weight.shape[1]
    assert h_p == _round_up(hidden, 128), "weight hidden dim mismatch with activations"
    inv_norm = jnp.asarray(inv_norm, jnp.float32).reshape(1, vocab)

    x2d = hidden_states.reshape(m, hidden)
    if hidden != h_p:  # tiny per-call pad of the activations only (usually a no-op)
        x2d = jnp.pad(x2d, ((0, 0), (0, h_p - hidden)))

    out_dtype = hidden_states.dtype
    xb = x2d.dtype.itemsize
    wb = weight.dtype.itemsize
    ob = jnp.dtype(out_dtype).itemsize

    # ---- tile selection -----------------------------------------------------
    tm = min(tm if tm is not None else 512, _round_up(m, 8))
    tm = _round_up(tm, 8)
    tn = _round_up(min(tn, _round_up(vocab, 128)), 128)
    tk = _pick_tk(h_p, tk_cap)

    # Single large-K dot per output tile if the double-buffered full-hidden
    # weight + activation tiles fit the VMEM budget (no acc scratch needed).
    fullk_bytes = 2 * tm * h_p * xb + 2 * tn * h_p * wb + 2 * tm * tn * ob + 2 * tn * 4
    use_fullk = fullk_bytes + (2 << 20) <= vmem_budget_bytes
    if use_fullk:
        tk = h_p

    gi = pl.cdiv(m, tm)
    gj = pl.cdiv(vocab, tn)
    gk = h_p // tk

    footprint = (2 * tm * h_p * xb + 2 * tn * tk * wb + 2 * tm * tn * ob
                 + 2 * tn * 4 + (0 if use_fullk else tm * tn * 4))
    vmem_limit = int(min(56 * (1 << 20), max(32 * (1 << 20), footprint + (4 << 20))))

    cost = pl.CostEstimate(
        flops=2 * m * vocab * h_p,
        transcendentals=0,
        bytes_accessed=(gi * vocab * h_p * wb + m * h_p * xb
                        + m * vocab * ob + gi * vocab * 4),
    )

    def _w_spec(shape, idx):
        if weight_pipeline_depth is None:
            return pl.BlockSpec(shape, idx)
        # e.g. depth=3 on v5e to ride out DMA jitter on the weight stream
        return pl.BlockSpec(shape, idx, pipeline_mode=pl.Buffered(weight_pipeline_depth))

    if use_fullk:
        out = pl.pallas_call(
            _normhead_fullk_kernel,
            out_shape=jax.ShapeDtypeStruct((m, vocab), out_dtype),
            grid_spec=pltpu.PrefetchScalarGridSpec(
                num_scalar_prefetch=0,
                grid=(gi, gj),
                in_specs=[
                    # activations: full-hidden block, fetched once per M tile
                    pl.BlockSpec((tm, h_p), lambda i, j: (i, 0)),
                    # raw weights: full-hidden vocab tile, streamed over j
                    _w_spec((tn, h_p), lambda i, j: (j, 0)),
                    # precomputed inverse row norms
                    pl.BlockSpec((1, tn), lambda i, j: (0, j)),
                ],
                out_specs=pl.BlockSpec((tm, tn), lambda i, j: (i, j)),
            ),
            compiler_params=pltpu.CompilerParams(
                dimension_semantics=("parallel", "parallel"),
                vmem_limit_bytes=vmem_limit,
            ),
            cost_estimate=cost,
        )(x2d, weight, inv_norm)
    else:
        out = pl.pallas_call(
            functools.partial(_normhead_ktiled_kernel, tk=tk),
            out_shape=jax.ShapeDtypeStruct((m, vocab), out_dtype),
            grid_spec=pltpu.PrefetchScalarGridSpec(
                num_scalar_prefetch=0,
                grid=(gi, gj, gk),
                in_specs=[
                    # activations: full-hidden block (sliced in-kernel per k)
                    pl.BlockSpec((tm, h_p), lambda i, j, k: (i, 0)),
                    # raw weights: (tn, tk) tile, streamed over (j, k)
                    _w_spec((tn, tk), lambda i, j, k: (j, k)),
                    pl.BlockSpec((1, tn), lambda i, j, k: (0, j)),
                ],
                out_specs=pl.BlockSpec((tm, tn), lambda i, j, k: (i, j)),
                scratch_shapes=[pltpu.VMEM((tm, tn), jnp.float32)],
            ),
            compiler_params=pltpu.CompilerParams(
                dimension_semantics=("parallel", "parallel", "arbitrary"),
                vmem_limit_bytes=vmem_limit,
            ),
            cost_estimate=cost,
        )(x2d, weight, inv_norm)

    return out.reshape(*lead, vocab)


def _init_weight(key, vocab_size, hidden_size, dtype=jnp.float32):
    # nn.init.kaiming_uniform_(w, a=sqrt(5)) on (vocab, hidden):
    # fan_in = hidden, gain = sqrt(1/3), bound = 1/sqrt(hidden)
    bound = 1.0 / math.sqrt(hidden_size)
    return jax.random.uniform(
        key, (vocab_size, hidden_size), dtype=dtype, minval=-bound, maxval=bound
    )


if __name__ == "__main__":
    key = jax.random.PRNGKey(0)
    k_x, k_w, k_x2, k_w2 = jax.random.split(key, 4)

    # --- Test 1: bf16 operands, prepared (init-time) weights ------------------
    batch, seq, hidden, vocab = 2, 8, 128, 256
    hidden_states = jax.random.normal(
        k_x, (batch, seq, hidden), dtype=jnp.float32
    ).astype(jnp.bfloat16)
    weight = _init_weight(k_w, vocab, hidden).astype(jnp.bfloat16)

    w_prep, inv_prep = prepare_norm_head(weight)       # done once at model init
    logits = norm_head(hidden_states, w_prep, inv_prep)
    jax.block_until_ready(logits)
    assert logits.shape == (batch, seq, vocab)
    assert logits.dtype == hidden_states.dtype

    w32 = weight.astype(jnp.float32)
    w_n = w32 / jnp.maximum(jnp.linalg.norm(w32, axis=1, keepdims=True), 1e-12)
    ref = jnp.einsum("bsh,vh->bsv", hidden_states.astype(jnp.float32), w_n)
    assert jnp.allclose(logits.astype(jnp.float32), ref, atol=2e-2, rtol=2e-2)

    # --- Test 2: f32 operands + ragged shapes (masked vocab/M/hidden edges) ---
    b2, s2, h2, v2 = 1, 5, 96, 200
    x2 = jax.random.normal(k_x2, (b2, s2, h2), dtype=jnp.float32)
    w2 = _init_weight(k_w2, v2, h2)
    logits2 = norm_head(x2, w2)                        # convenience path
    jax.block_until_ready(logits2)
    assert logits2.shape == (b2, s2, v2)

    w2n = w2 / jnp.maximum(jnp.linalg.norm(w2, axis=1, keepdims=True), 1e-12)
    ref2 = jnp.einsum("bsh,vh->bsv", x2, w2n)
    assert jnp.allclose(logits2, ref2, atol=2e-2, rtol=2e-2)

    print("KERNEL_OK")
</pallas_src>

<mosaic_0001>
module attributes {stable_mosaic.version = 11 : i64} {
  func.func @_normhead_fullk_kernel(%arg0: i32, %arg1: i32, %arg2: memref<16x128xbf16, #tpu.memory_space<vmem>>, %arg3: memref<256x128xbf16, #tpu.memory_space<vmem>>, %arg4: memref<1x256xf32, #tpu.memory_space<vmem>>, %arg5: memref<16x256xbf16, #tpu.memory_space<vmem>>) attributes {dimension_semantics = [#tpu.dimension_semantics<parallel>, #tpu.dimension_semantics<parallel>], iteration_bounds = array<i64: 1, 1>, scalar_prefetch = 0 : i64, scratch_operands = 0 : i64, tpu.core_type = #tpu.core_type<tc>, window_params = [{transform_indices = @transform_0, window_bounds = array<i64: 16, 128>}, {transform_indices = @transform_1, window_bounds = array<i64: 256, 128>}, {transform_indices = @transform_2, window_bounds = array<i64: 1, 256>}, {transform_indices = @transform_3, window_bounds = array<i64: 16, 256>}]} {
    %c0 = arith.constant 0 : index
    %c0_0 = arith.constant 0 : index
    %0 = vector.load %arg2[%c0, %c0_0] : memref<16x128xbf16, #tpu.memory_space<vmem>>, vector<16x128xbf16>
    %c0_1 = arith.constant 0 : index
    %c0_2 = arith.constant 0 : index
    %1 = vector.load %arg3[%c0_1, %c0_2] : memref<256x128xbf16, #tpu.memory_space<vmem>>, vector<256x128xbf16>
    %cst = arith.constant dense<0.000000e+00> : vector<16x256xf32>
    %2 = tpu.matmul %0, %1, %cst {dimension_numbers = #tpu.dot_dimension_numbers<[1], [1], [0], [0], [0, 0, 1, 0], [], []>} : vector<16x128xbf16>, vector<256x128xbf16>, vector<16x256xf32> -> vector<16x256xf32>
    %c0_3 = arith.constant 0 : index
    %c0_4 = arith.constant 0 : index
    %3 = vector.load %arg4[%c0_3, %c0_4] : memref<1x256xf32, #tpu.memory_space<vmem>>, vector<1x256xf32>
    %4 = vector.broadcast %3 : vector<1x256xf32> to vector<16x256xf32>
    %5 = arith.mulf %2, %4 : vector<16x256xf32>
    %6 = arith.truncf %5 : vector<16x256xf32> to vector<16x256xbf16>
    %c0_5 = arith.constant 0 : index
    %c0_6 = arith.constant 0 : index
    %7 = vector.load %arg5[%c0_5, %c0_6] : memref<16x256xbf16, #tpu.memory_space<vmem>>, vector<16x256xbf16>
    tpu.vector_store %arg5[%c0_5, %c0_6], %6 {strides = array<i32>} : memref<16x256xbf16, #tpu.memory_space<vmem>>, vector<16x256xbf16>,
    return
  }
  func.func @transform_0(%arg0: i32, %arg1: i32) -> (i32, i32) {
    %c0_i32 = arith.constant 0 : i32
    %c0_i32_0 = arith.constant 0 : i32
    return %arg0, %c0_i32 : i32, i32
  }
  func.func @transform_1(%arg0: i32, %arg1: i32) -> (i32, i32) {
    %c0_i32 = arith.constant 0 : i32
    %c0_i32_0 = arith.constant 0 : i32
    return %arg1, %c0_i32 : i32, i32
  }
  func.func @transform_2(%arg0: i32, %arg1: i32) -> (i32, i32) {
    %c0_i32 = arith.constant 0 : i32
    %c0_i32_0 = arith.constant 0 : i32
    return %c0_i32, %arg1 : i32, i32
  }
  func.func @transform_3(%arg0: i32, %arg1: i32) -> (i32, i32) {
    %c0_i32 = arith.constant 0 : i32
    return %arg0, %arg1 : i32, i32
  }
}

</mosaic_0001>

<bundles_post_ra>
// kernel: tpu_custom_call.1
= control target key start
LH: loop header
LB: loop body
LE: loop exit
PB: predicated region body
PF: predicated region fallthrough
CT: control target
= control target key end

     0   :  { %8 = vsyncpa [#allocation3], 0  ;;  %s472_s0 = inlined_call_operand.hbm [shape: bf16[16,128], index: 0, kind: input, shape index: {}]   ;;  %s473_s1 = inlined_call_operand.hbm [shape: bf16[256,128], index: 1, kind: input, shape index: {}]   ;;  %s474_s2 = inlined_call_operand.vmem [shape: f32[1,256], index: 2, kind: input, shape index: {}]   ;;  %s475_s3 = inlined_call_operand.hbm [shape: bf16[16,256], index: 3, kind: output, shape index: {}]  }
   0x1   :  { %9 = vsyncpa [#allocation6], 0 }
   0x2   :  { %10 = vsyncpa [#allocation4], 0  ;;  %s406_s12 = smov [#allocation2]   ;;  %s334_s16 = scalar_lea.hbm %s472_s0, 128 }
   0x3   :  { %s16_s13 = sshll.u32 %s406_s12, 4  ;;  %p335_p0 = scmp.ne.s32.totalorder %s472_s0, %s334_s16  ;;  %s17_s13 = int_to_ptr.vmem [resolvable:$true] %s16_s13 }
   0x4   :  { %p338_p1 = scmp.lt.u32.totalorder %s334_s16, %s472_s0 }
   0x6   :  { %p340_p2 = pnand %p338_p1, %p335_p0 }
   0x8   :  { %343 = shalt.err (!%p340_p2)
}
   0x9   :  { %s344_s21 = scalar_lea.vmem %s17_s13, 128  ;;  %p349_p4 = scmp.lt.s32.totalorder %s17_s13, %s17_s13 }
   0xa   :  { %p345_p3 = scmp.ne.s32.totalorder %s17_s13, %s344_s21  ;;  %p350_p5 = scmp.lt.s32.totalorder %s344_s21, %s344_s21 }
   0xc   :  { %p351_p6 = por %p350_p5, %p349_p4 }
   0xe   :  { %p352_p7 = pnand %p351_p6, %p345_p3 }
  0x10   :  { %355 = shalt.err (!%p352_p7)
}
  0x11   :  { %s407_s22 = smov 64   ;;  %s408_s23 = smov 4  }
  0x12   :  { %22 = dma.hbm_to_vmem [thread:$0]  %s472_s0, 128, %s17_s13, [#allocation3], %s407_s22, %s407_s22, %s408_s23  }
  0x13   :  { %s409_s26 = smov [#allocation5]   ;;  %s356_s30 = scalar_lea.hbm %s473_s1, 2048 }
  0x14   :  { %s28_s27 = sshll.u32 %s409_s26, 4  ;;  %p357_p8 = scmp.ne.s32.totalorder %s473_s1, %s356_s30  ;;  %s29_s27 = int_to_ptr.vmem [resolvable:$true] %s28_s27 }
  0x15   :  { %p360_p9 = scmp.lt.u32.totalorder %s356_s30, %s473_s1 }
  0x17   :  { %p362_p10 = pnand %p360_p9, %p357_p8 }
  0x19   :  { %365 = shalt.err (!%p362_p10)
}
  0x1a   :  { %s366_s8 = scalar_lea.vmem %s29_s27, 2048  ;;  %p371_p12 = scmp.lt.s32.totalorder %s29_s27, %s29_s27 }
  0x1b   :  { %p367_p11 = scmp.ne.s32.totalorder %s29_s27, %s366_s8  ;;  %p372_p13 = scmp.lt.s32.totalorder %s366_s8, %s366_s8 }
  0x1d   :  { %p373_p0 = por %p372_p13, %p371_p12 }
  0x1f   :  { %p374_p1 = pnand %p373_p0, %p367_p11 }
  0x21   :  { %377 = shalt.err (!%p374_p1)
}
  0x22   :  { %34 = dma.hbm_to_vmem [thread:$0]  %s473_s1, 2048, %s29_s27, [#allocation6], %s407_s22, %s407_s22, %s408_s23  }
  0x23   :  { %400 = dma.done.wait [#allocation3], 128  }
  0x24   :  { %401 = vsyncadd [#allocation3], 4294967168 }
  0x25   :  { %402 = dma.done.wait [#allocation6], 2048  }
  0x26   :  { %403 = vsyncadd [#allocation6], 4294965248  ;;  %v317_v0 = vld [vmem:[#allocation5 + $0x40] sm:$0xff]   ;;  %v319_v2 = vld [vmem:[#allocation5 + $0x48] sm:$0xff]   ;;  %v225_v17 = vlaneseq  ;;  %s410_s11 = smov [#allocation7]  }
  0x27   :  { %v318_v1 = vld [vmem:[#allocation5] sm:$0xff]   ;;  %292 = vmatprep.subr.bf16.mxu0 %v317_v0  ;;  %v320_v3 = vld [vmem:[#allocation5 + $0x8] sm:$0xff]   ;;  %v321_v4 = vld [vmem:[#allocation5 + $0x50] sm:$0xff]   ;;  %s258_s12 = sshll.u32 %s410_s11, 4  ;;  %s259_s12 = int_to_ptr.vmem [resolvable:$true] %s258_s12 }
  0x28   :  { %293 = vmatpush3.bf16.xpose.msra.mxu0 %v318_v1  ;;  %v322_v5 = vld [vmem:[#allocation5 + $0x10] sm:$0xff]   ;;  %v323_v6 = vld [vmem:[#allocation5 + $0x58] sm:$0xff]   ;;  %v325_v9 = vld [vmem:[#allocation5 + $0x60] sm:$0xff]   ;;  %v226_v18 = vshrl.u32 %v225_v17, 7  ;;  %s378_s13 = scalar_lea.vmem %s259_s12, 256  ;;  %p383_p3 = scmp.lt.s32.totalorder %s259_s12, %s259_s12 }
  0x29   :  { %294 = vmatprep.subr.bf16.mxu0 %v319_v2  ;;  %v333_v7 = vld [vmem:[#allocation2] sm:$0xff]   ;;  %v326_v10 = vld [vmem:[#allocation5 + $0x20] sm:$0xff]   ;;  %v327_v11 = vld [vmem:[#allocation5 + $0x68] sm:$0xff]   ;;  %p379_p2 = scmp.ne.s32.totalorder %s259_s12, %s378_s13  ;;  %p384_p4 = scmp.lt.s32.totalorder %s378_s13, %s378_s13 }
  0x2a   :  { %308 = vmatprep.mubr.bf16.mxu0 %v333_v7  ;;  %v324_v8 = vld [vmem:[#allocation5 + $0x18] sm:$0xff]   ;;  %v328_v12 = vld [vmem:[#allocation5 + $0x28] sm:$0xff]   ;;  %v329_v13 = vld [vmem:[#allocation5 + $0x70] sm:$0xff]   ;;  %v227_v19 = vsub.s32 0, %v226_v18  ;;  %v231_v21 = vsub.s32 1, %v226_v18 }
  0x2b   :  { %v330_v14 = vld [vmem:[#allocation5 + $0x30] sm:$0xff]   ;;  %v331_v15 = vld [vmem:[#allocation5 + $0x78] sm:$0xff]   ;;  %p385_p5 = por %p384_p4, %p383_p3 }
  0x2c   :  { %v332_v16 = vld [vmem:[#allocation5 + $0x38] sm:$0xff]  }
  0x2d   :  { %v223_v20 = vld [vmem:[%s474_s2] sm:$0x3]  ;;  %p386_p6 = pnand %p385_p5, %p379_p2 }
  0x2e   :  { %v228_v22 = vrot.slane %v223_v20, %v227_v19  ;;  %v232_v23 = vrot.slane %v223_v20, %v231_v21 }
  0x30   :  { %295 = vmatpush3.bf16.xpose.msra.mxu0 %v320_v3 }
  0x31   :  { %296 = vmatprep.subr.bf16.mxu0 %v321_v4 }
  0x38   :  { %297 = vmatpush3.bf16.xpose.msra.mxu0 %v322_v5 }
  0x39   :  { %298 = vmatprep.subr.bf16.mxu0 %v323_v6 }
  0x40   :  { %299 = vmatpush3.bf16.xpose.msra.mxu0 %v324_v8 }
  0x41   :  { %300 = vmatprep.subr.bf16.mxu0 %v325_v9 }
  0x48   :  { %301 = vmatpush3.bf16.xpose.msra.mxu0 %v326_v10 }
  0x49   :  { %302 = vmatprep.subr.bf16.mxu0 %v327_v11 }
  0x50   :  { %303 = vmatpush3.bf16.xpose.msra.mxu0 %v328_v12 }
  0x51   :  { %304 = vmatprep.subr.bf16.mxu0 %v329_v13 }
  0x58   :  { %305 = vmatpush3.bf16.xpose.msra.mxu0 %v330_v14 }
  0x59   :  { %306 = vmatprep.subr.bf16.mxu0 %v331_v15 }
  0x60   :  { %307 = vmatpush3.bf16.xpose.msra.mxu0 %v332_v16 }
  0x67   :  { %309 = vmatmul.mubr.bf16.vlgmr.msra.gmra.mrb[0].mxu0 %v333_v7 }
 0x13a   :  { %v214_v24 = vpop.f32.mrb[0].mxu0 }
 0x13b   :  { %v235_v25 = vmul.f32 %v228_v22, %v214_v24  ;;  %v216_v26 = vpop.f32.mrb[1].mxu0 }
 0x13c   :  { %v236_v27 = vmul.f32 %v232_v23, %v216_v26  ;;  %v218_v28 = vpop.f32.mrb[2].mxu0 }
 0x13d   :  { %v237_v29 = vmul.f32 %v228_v22, %v218_v28  ;;  %v220_v30 = vpop.f32.mrb[3].mxu0 }
 0x13e   :  { %v290_v31 = vpack.c.bf16 %v236_v27, %v235_v25  ;;  %v238_v32 = vmul.f32 %v232_v23, %v220_v30 }
 0x140   :  { %251 = vst [vmem:[#allocation7] sm:$0xff] %v290_v31  ;;  %v291_v33 = vpack.c.bf16 %v238_v32, %v237_v29 }
 0x142   :  { %252 = vst [vmem:[#allocation7 + $0x8] sm:$0xff] %v291_v33 }
 0x143   :  { %389 = shalt.err (!%p386_p6)
}
 0x144   :  { %s390_s15 = scalar_lea.hbm %s475_s3, 256 }
 0x145   :  { %p391_p7 = scmp.ne.s32.totalorder %s475_s3, %s390_s15  ;;  %p394_p8 = scmp.lt.u32.totalorder %s390_s15, %s475_s3 }
 0x147   :  { %p396_p9 = pnand %p394_p8, %p391_p7 }
 0x149   :  { %399 = shalt.err (!%p396_p9)
}
 0x14a   :  { %s411_s20 = smov 128   ;;  %s412_s21 = smov 8  }
 0x14b   :  { %264 = dma.vmem_to_hbm [thread:$0]  %s259_s12, 256, %s475_s3, [#allocation4], %s411_s20, %s411_s20, %s412_s21  }
 0x14c   :  { %404 = dma.done.wait [#allocation4], 256  }
 0x14d   :  { %405 = vsyncadd [#allocation4], 4294967040 }
 0x14e   :  { %268 = vsyncpa [#allocation3], 1 }
 0x14f   :  { %269 = vsyncpa [#allocation6], 1 }
 0x150   :  { %270 = vsyncpa [#allocation4], 1 }

</bundles_post_ra>
